<compile_context>
chip_gen: v7x
topology: tpu7x:2x2x1
jax: 0.10.0
libtpu: 0.0.40
codegen_flags: <defaults>
</compile_context>

<pallas_src>
import functools

import jax
import jax.numpy as jnp
from jax import lax
from jax.experimental import pallas as pl
from jax.experimental.pallas import tpu as pltpu


def _round_up(x, m):
    return ((x + m - 1) // m) * m


def _vmem_capacity_bytes():
    try:
        info = pltpu.get_tpu_info()
        cap = getattr(info, "vmem_capacity_bytes", None)
        if cap:
            return int(cap)
    except Exception:
        pass
    return 64 << 20  # conservative: v7x per-TensorCore physical VMEM


def _default_span_tile():
    try:
        kind = jax.devices()[0].device_kind.lower()
    except Exception:
        kind = ""
    # v5e MXU is 4x128^2 -> 128 rows already fill it; v6e/v7x are 2x256^2.
    return 128 if "v5" in kind else 256


def _span_average_kernel(*refs, max_width, d_model, s_len, local_last,
                         span_embed, vpu_embed_max=16):
    if span_embed:
        be_ref, x_ref, tbl_ref, out_ref, acc_ref = refs
    else:
        be_ref, x_ref, out_ref, acc_ref = refs
        tbl_ref = None

    k = pl.program_id(2)
    nk = pl.num_programs(2)
    tn = be_ref.shape[1]          # spans in this tile
    ts = x_ref.shape[1]           # sequence positions in this chunk

    @pl.when(k == 0)
    def _init():
        acc_ref[...] = jnp.zeros_like(acc_ref)

    be = be_ref[0]                # (TN, 2) int32: [:,0]=begin, [:,1]=end (incl)
    bb = be[:, 0:1]               # (TN, 1)
    ee = be[:, 1:2]               # (TN, 1)
    x = x_ref[0]                  # (TS, D) in matmul dtype (bf16 by default)

    # Last un-clamped index the mask admits, and its restriction to the
    # "interior" positions s < S-1.  The clamp column S-1 is handled as a
    # rank-1 update at the final chunk -> no full-width (TN,S) select, and
    # zero-padded rows s >= S automatically get count 0.
    last = jnp.minimum(ee, bb + (max_width - 1))            # (TN, 1)
    last_int = jnp.minimum(last, s_len - 2)                 # (TN, 1)

    s_iota = lax.broadcasted_iota(jnp.int32, (tn, ts), 1) + k * ts
    count = jnp.logical_and(s_iota >= bb, s_iota <= last_int).astype(x.dtype)

    # Un-normalized partial sum on the MXU (0/1 counts are exact in bf16;
    # accumulation stays f32 in the scratch).
    acc_ref[...] += jnp.dot(count, x, preferred_element_type=jnp.float32)

    @pl.when(k == nk - 1)
    def _finalize():
        lengths = jnp.clip(ee - bb + 1, 0, max_width).astype(jnp.float32)
        # Every (possibly clamped) span index >= S-1 lands on row S-1.
        cnt_last = jnp.maximum(last - jnp.maximum(bb, s_len - 1) + 1, 0)
        x_last = x_ref[0, local_last:local_last + 1, :].astype(jnp.float32)  # (1, D)
        avg = acc_ref[...] + cnt_last.astype(jnp.float32) * x_last
        # Post-matmul normalization: TN exact f32 divisions only.
        # (lengths == 0 -> inf * 0 = NaN, matching the reference 0/0.)
        avg = avg * (1.0 / lengths)

        if not span_embed:
            out_ref[0, :, :] = avg.astype(out_ref.dtype)
            return

        out_ref[0, :, :d_model] = avg.astype(out_ref.dtype)

        # span-width embedding tbl[e - b], folded into the same output tile.
        # Out-of-range widths -> zero row (nn.Embedding would raise; callers
        # guarantee 0 <= e-b < L).
        width = ee - bb                                       # (TN, 1)
        n_embed, e_dim = tbl_ref.shape
        if n_embed <= vpu_embed_max:
            # Tiny table: VPU select-accumulate, no extra MXU pass.
            emb = jnp.zeros((tn, e_dim), jnp.float32)
            for l in range(n_embed):
                sel = (width == l).astype(jnp.float32)        # (TN, 1)
                row = tbl_ref[l:l + 1, :].astype(jnp.float32)  # (1, E)
                emb = emb + sel * row
        else:
            w_iota = lax.broadcasted_iota(jnp.int32, (tn, n_embed), 1)
            one_hot = (w_iota == width).astype(jnp.float32)
            emb = jnp.dot(one_hot, tbl_ref[...].astype(jnp.float32),
                          preferred_element_type=jnp.float32)
        # TODO(synk): if D % 128 == 0 and store bandwidth matters, pad the
        # embedding slab to 128 lanes for fully unmasked vst (layout plumbing).
        out_ref[0, :, d_model:] = emb.astype(out_ref.dtype)


def span_average_pallas(inputs, b, e, max_width, embed_table=None, *,
                        span_tile=None, seq_tile=None,
                        matmul_dtype=jnp.bfloat16, out_dtype=None):
    """SpanAverage.forward. inputs (B,S,D); b,e (B,N) int (end inclusive).

    Returns (B, N, D) or, if embed_table (the nn.Embedding weight of shape
    (max_span_length, span_embed)) is given, (B, N, D + span_embed) with the
    width-embedding lookup fused into the same output buffer (no XLA concat).
    """
    B, S, D = inputs.shape
    _, N = b.shape
    span_embed = embed_table is not None
    L, E = embed_table.shape if span_embed else (0, 0)
    d_out = D + E

    out_dtype = out_dtype or inputs.dtype          # pass bf16 to halve writeback
    matmul_dtype = jnp.dtype(matmul_dtype)
    in_bytes = matmul_dtype.itemsize
    out_bytes = jnp.dtype(out_dtype).itemsize
    cap = _vmem_capacity_bytes()

    # ---- span tile: multiple of 8; fills the MXU rows of the generation.
    tn = span_tile if span_tile is not None else min(_default_span_tile(),
                                                     _round_up(N, 8))
    assert tn % 8 == 0
    n_pad = _round_up(N, tn)

    # ---- sequence chunking: bound the double-buffered input block and the
    # (TN,TS) count working set independent of S (v7x has 64 MiB VMEM).
    if seq_tile is None:
        budget = min(cap // 3, 32 << 20)
        ts = budget // (2 * D * in_bytes)
        ts = min(ts, (8 << 20) // max(1, tn * in_bytes))
        ts = max(8, (ts // 8) * 8)
        if S <= ts:
            ts = S
    else:
        ts = seq_tile
        assert ts % 8 == 0 or ts == S
    s_pad = _round_up(S, ts)

    # ---- wrapper-side cast to the MXU-native dtype (single XLA cast, halves
    # HBM read + resident VMEM; removes the per-tile VPU cast in the kernel).
    x = inputs.astype(matmul_dtype)
    if s_pad != S:
        x = jnp.pad(x, ((0, 0), (0, s_pad - S), (0, 0)))       # zero rows: count=0

    # ---- pack (b, e) into one (B, N, 2) input: one tiny DMA per step.
    be = jnp.stack([b.astype(jnp.int32), e.astype(jnp.int32)], axis=-1)
    if n_pad != N:
        be = jnp.pad(be, ((0, 0), (0, n_pad - N), (0, 0)))      # b=e=0 -> length 1

    grid = (B, n_pad // tn, s_pad // ts)

    in_specs = [
        pl.BlockSpec((1, tn, 2), lambda i, j, k: (i, j, 0)),    # packed (b, e)
        pl.BlockSpec((1, ts, D), lambda i, j, k: (i, k, 0)),    # sequence chunk
    ]
    args = [be, x]
    if span_embed:
        in_specs.append(pl.BlockSpec((L, E), lambda i, j, k: (0, 0)))
        args.append(embed_table)

    vmem_need = (2 * ts * D * in_bytes            # input chunk, double-buffered
                 + 2 * tn * 2 * 4                 # packed (b, e)
                 + 2 * tn * d_out * out_bytes     # combined output block
                 + 2 * L * max(E, 1) * 4          # embedding table
                 + tn * D * 4                     # f32 accumulator scratch
                 + 2 * tn * ts * in_bytes         # count / mask working set
                 + (2 << 20))                     # slack
    # generation-dependent cap (v5e/v6e: 128 MiB physical, v7x: 64 MiB).
    vmem_limit = int(min(max(vmem_need, 32 << 20), cap - (8 << 20)))

    kernel = functools.partial(
        _span_average_kernel, max_width=int(max_width), d_model=D, s_len=S,
        local_last=(S - 1) % ts, span_embed=span_embed)

    out = pl.pallas_call(
        kernel,
        out_shape=jax.ShapeDtypeStruct((B, n_pad, d_out), out_dtype),
        grid=grid,
        in_specs=in_specs,
        out_specs=pl.BlockSpec((1, tn, d_out), lambda i, j, k: (i, j, 0)),
        scratch_shapes=[pltpu.VMEM((tn, D), jnp.float32)],
        compiler_params=pltpu.CompilerParams(
            # batch and span tiles are fully independent -> both parallel
            # (keeps both v7x TensorCores busy even at B=1); the S-chunk axis
            # reduces into the scratch accumulator -> arbitrary, innermost.
            dimension_semantics=("parallel", "parallel", "arbitrary"),
            vmem_limit_bytes=vmem_limit),
    )(*args)

    if n_pad != N:
        out = out[:, :N, :]
    return out


# ---------- pure-JAX reference (mirrors the PyTorch code) ----------
def span_average_ref(inputs, b, e, max_width):
    w = jnp.arange(max_width)
    indices = b[:, :, None] + w[None, None, :]                   # (B, N, W)
    clamped = jnp.minimum(indices, inputs.shape[1] - 1)
    vectors = jax.vmap(lambda x, idx: x[idx])(inputs, clamped)   # (B, N, W, D)
    mask = (indices <= e[:, :, None]).astype(jnp.float32)
    lengths = mask.sum(-1)
    probs = mask / lengths[..., None]
    return jnp.einsum('bnw,bnwd->bnd', probs, vectors)


if __name__ == "__main__":
    B, S, D = 2, 16, 32          # batch, sequence, hidden (dim_input)
    N = 8                        # spans per example
    max_span_length = 4
    max_width = 4
    span_embed_dim = 8           # config['span_embed']

    key = jax.random.PRNGKey(0)
    k1, k2, k3, k4 = jax.random.split(key, 4)
    inputs = jax.random.normal(k1, (B, S, D), dtype=jnp.float32)
    b = jax.random.randint(k2, (B, N), 0, S, dtype=jnp.int32)
    widths = jax.random.randint(k3, (B, N), 0, max_span_length, dtype=jnp.int32)
    e = b + widths               # end inclusive; may exceed S-1 (exercises clamp path)

    # nn.Embedding(max_span_length, span_embed) default init ~ N(0, 1)
    embed_table = jax.random.normal(k4, (max_span_length, span_embed_dim),
                                    dtype=jnp.float32)

    # The kernel intentionally runs the gather-matmul in bf16 (wrapper-side
    # cast); compare against a reference computed on the same bf16-cast inputs
    # so the check isolates kernel logic (products of bf16 values are exact in
    # the f32 accumulator).
    inputs_q = inputs.astype(jnp.bfloat16).astype(jnp.float32)
    ref_avg = span_average_ref(inputs_q, b, e, max_width)
    ref_emb = embed_table[e - b]
    ref = jnp.concatenate([ref_avg, ref_emb], axis=-1)

    out = span_average_pallas(inputs, b, e, max_width, embed_table)
    out = jax.block_until_ready(out)
    assert out.shape == (B, N, D + span_embed_dim)
    assert jnp.allclose(out, ref, atol=1e-5, rtol=1e-5), \
        float(jnp.max(jnp.abs(out - ref)))

    # Exercise the chunked-S reduction and padded-N paths explicitly.
    out2 = span_average_pallas(inputs, b, e, max_width, embed_table,
                               span_tile=16, seq_tile=8)
    out2 = jax.block_until_ready(out2)
    assert jnp.allclose(out2, ref, atol=1e-5, rtol=1e-5), \
        float(jnp.max(jnp.abs(out2 - ref)))

    # S not a multiple of the sequence tile -> wrapper zero-pads S.
    S2 = 20
    inputs2 = jax.random.normal(k1, (B, S2, D), dtype=jnp.float32)
    b2 = jax.random.randint(k2, (B, N), 0, S2, dtype=jnp.int32)
    e2 = b2 + widths
    ref2 = jnp.concatenate(
        [span_average_ref(inputs2.astype(jnp.bfloat16).astype(jnp.float32),
                          b2, e2, max_width),
         embed_table[e2 - b2]], axis=-1)
    out3 = span_average_pallas(inputs2, b2, e2, max_width, embed_table,
                               seq_tile=8)
    out3 = jax.block_until_ready(out3)
    assert jnp.allclose(out3, ref2, atol=1e-5, rtol=1e-5), \
        float(jnp.max(jnp.abs(out3 - ref2)))

    # Module variant without 'span_embed' in config.
    out4 = span_average_pallas(inputs, b, e, max_width, None)
    out4 = jax.block_until_ready(out4)
    assert jnp.allclose(out4, ref_avg, atol=1e-5, rtol=1e-5), \
        float(jnp.max(jnp.abs(out4 - ref_avg)))

    print("KERNEL_OK")
</pallas_src>

<mosaic_0001>
module attributes {stable_mosaic.version = 11 : i64} {
  func.func @_span_average_kernel(%arg0: i32, %arg1: i32, %arg2: i32, %arg3: memref<1x8x2xi32, #tpu.memory_space<vmem>>, %arg4: memref<1x16x32xbf16, #tpu.memory_space<vmem>>, %arg5: memref<4x8xf32, #tpu.memory_space<vmem>>, %arg6: memref<1x8x40xf32, #tpu.memory_space<vmem>>, %arg7: memref<8x32xf32, #tpu.memory_space<vmem>>) attributes {dimension_semantics = [#tpu.dimension_semantics<parallel>, #tpu.dimension_semantics<parallel>, #tpu.dimension_semantics<arbitrary>], iteration_bounds = array<i64: 2, 1, 1>, scalar_prefetch = 0 : i64, scratch_operands = 1 : i64, tpu.core_type = #tpu.core_type<tc>, window_params = [{transform_indices = @transform_0, window_bounds = array<i64: 1, 8, 2>}, {transform_indices = @transform_1, window_bounds = array<i64: 1, 16, 32>}, {pipeline_mode = #tpu.pipeline_mode<synchronous>, transform_indices = @transform_2, window_bounds = array<i64: 4, 8>}, {transform_indices = @transform_3, window_bounds = array<i64: 1, 8, 40>}]} {
    %c0_i32 = arith.constant 0 : i32
    %0 = arith.cmpi eq, %arg2, %c0_i32 : i32
    %1 = arith.extui %0 : i1 to i32
    %c0_i32_0 = arith.constant 0 : i32
    %2 = arith.cmpi ne, %1, %c0_i32_0 : i32
    scf.if %2 {
      %cst_12 = arith.constant 0.000000e+00 : f32
      %33 = vector.broadcast %cst_12 : f32 to vector<8x32xf32>
      %c0_13 = arith.constant 0 : index
      %c0_14 = arith.constant 0 : index
      %34 = vector.load %arg7[%c0_13, %c0_14] : memref<8x32xf32, #tpu.memory_space<vmem>>, vector<8x32xf32>
      tpu.vector_store %arg7[%c0_13, %c0_14], %33 {strides = array<i32>} : memref<8x32xf32, #tpu.memory_space<vmem>>, vector<8x32xf32>,
    } else {
    }
    %c0 = arith.constant 0 : index
    %c0_1 = arith.constant 0 : index
    %c0_2 = arith.constant 0 : index
    %3 = vector.load %arg3[%c0, %c0_1, %c0_2] : memref<1x8x2xi32, #tpu.memory_space<vmem>>, vector<1x8x2xi32>
    %4 = vector.shape_cast %3 : vector<1x8x2xi32> to vector<8x2xi32>
    %5 = vector.extract_strided_slice %4 {offsets = [0, 0], sizes = [8, 1], strides = [1, 1]} : vector<8x2xi32> to vector<8x1xi32>
    %6 = vector.extract_strided_slice %4 {offsets = [0, 1], sizes = [8, 1], strides = [1, 1]} : vector<8x2xi32> to vector<8x1xi32>
    %c0_3 = arith.constant 0 : index
    %c0_4 = arith.constant 0 : index
    %c0_5 = arith.constant 0 : index
    %7 = vector.load %arg4[%c0_3, %c0_4, %c0_5] : memref<1x16x32xbf16, #tpu.memory_space<vmem>>, vector<1x16x32xbf16>
    %8 = vector.shape_cast %7 : vector<1x16x32xbf16> to vector<16x32xbf16>
    %c3_i32 = arith.constant 3 : i32
    %9 = vector.broadcast %c3_i32 : i32 to vector<8x1xi32>
    %10 = arith.addi %5, %9 : vector<8x1xi32>
    %11 = arith.minsi %6, %10 : vector<8x1xi32>
    %c14_i32 = arith.constant 14 : i32
    %12 = vector.broadcast %c14_i32 : i32 to vector<8x1xi32>
    %13 = arith.minsi %11, %12 : vector<8x1xi32>
    %14 = tpu.iota {dimensions = array<i32: 1>} : vector<8x16xi32>
    %c16_i32 = arith.constant 16 : i32
    %15 = arith.muli %arg2, %c16_i32 : i32
    %16 = vector.broadcast %15 : i32 to vector<8x16xi32>
    %17 = arith.addi %14, %16 : vector<8x16xi32>
    %18 = vector.broadcast %5 : vector<8x1xi32> to vector<8x16xi32>
    %19 = arith.cmpi sge, %17, %18 : vector<8x16xi32>
    %20 = vector.broadcast %13 : vector<8x1xi32> to vector<8x16xi32>
    %21 = arith.cmpi sle, %17, %20 : vector<8x16xi32>
    %22 = arith.andi %19, %21 : vector<8x16xi1>
    %23 = arith.extui %22 : vector<8x16xi1> to vector<8x16xi32>
    %24 = arith.sitofp %23 : vector<8x16xi32> to vector<8x16xf32>
    %25 = arith.truncf %24 : vector<8x16xf32> to vector<8x16xbf16>
    %c0_6 = arith.constant 0 : index
    %c0_7 = arith.constant 0 : index
    %26 = vector.load %arg7[%c0_6, %c0_7] : memref<8x32xf32, #tpu.memory_space<vmem>>, vector<8x32xf32>
    %cst = arith.constant dense<0.000000e+00> : vector<8x32xf32>
    %27 = tpu.matmul %25, %8, %cst {dimension_numbers = #tpu.dot_dimension_numbers<[1], [0], [0], [1], [0, 0, 1, 1], [], []>} : vector<8x16xbf16>, vector<16x32xbf16>, vector<8x32xf32> -> vector<8x32xf32>
    %28 = arith.addf %26, %27 : vector<8x32xf32>
    %c0_8 = arith.constant 0 : index
    %c0_9 = arith.constant 0 : index
    %29 = vector.load %arg7[%c0_8, %c0_9] : memref<8x32xf32, #tpu.memory_space<vmem>>, vector<8x32xf32>
    tpu.vector_store %arg7[%c0_8, %c0_9], %28 {strides = array<i32>} : memref<8x32xf32, #tpu.memory_space<vmem>>, vector<8x32xf32>,
    %c0_i32_10 = arith.constant 0 : i32
    %30 = arith.cmpi eq, %arg2, %c0_i32_10 : i32
    %31 = arith.extui %30 : i1 to i32
    %c0_i32_11 = arith.constant 0 : i32
    %32 = arith.cmpi ne, %31, %c0_i32_11 : i32
    scf.if %32 {
      %33 = arith.subi %6, %5 : vector<8x1xi32>
      %c1_i32 = arith.constant 1 : i32
      %34 = vector.broadcast %c1_i32 : i32 to vector<8x1xi32>
      %35 = arith.addi %33, %34 : vector<8x1xi32>
      %c0_i32_12 = arith.constant 0 : i32
      %c4_i32 = arith.constant 4 : i32
      %36 = vector.broadcast %c0_i32_12 : i32 to vector<8x1xi32>
      %37 = arith.maxsi %36, %35 : vector<8x1xi32>
      %38 = vector.broadcast %c4_i32 : i32 to vector<8x1xi32>
      %39 = arith.minsi %38, %37 : vector<8x1xi32>
      %40 = arith.sitofp %39 : vector<8x1xi32> to vector<8x1xf32>
      %c15_i32 = arith.constant 15 : i32
      %41 = vector.broadcast %c15_i32 : i32 to vector<8x1xi32>
      %42 = arith.maxsi %5, %41 : vector<8x1xi32>
      %43 = arith.subi %11, %42 : vector<8x1xi32>
      %c1_i32_13 = arith.constant 1 : i32
      %44 = vector.broadcast %c1_i32_13 : i32 to vector<8x1xi32>
      %45 = arith.addi %43, %44 : vector<8x1xi32>
      %c0_i32_14 = arith.constant 0 : i32
      %46 = vector.broadcast %c0_i32_14 : i32 to vector<8x1xi32>
      %47 = arith.maxsi %45, %46 : vector<8x1xi32>
      %c0_15 = arith.constant 0 : index
      %c15 = arith.constant 15 : index
      %c0_16 = arith.constant 0 : index
      %48 = vector.load %arg4[%c0_15, %c15, %c0_16] : memref<1x16x32xbf16, #tpu.memory_space<vmem>>, vector<1x1x32xbf16>
      %49 = vector.shape_cast %48 : vector<1x1x32xbf16> to vector<1x32xbf16>
      %50 = arith.extf %49 : vector<1x32xbf16> to vector<1x32xf32>
      %c0_17 = arith.constant 0 : index
      %c0_18 = arith.constant 0 : index
      %51 = vector.load %arg7[%c0_17, %c0_18] : memref<8x32xf32, #tpu.memory_space<vmem>>, vector<8x32xf32>
      %52 = arith.sitofp %47 : vector<8x1xi32> to vector<8x1xf32>
      %53 = vector.broadcast %52 : vector<8x1xf32> to vector<8x32xf32>
      %54 = vector.broadcast %50 : vector<1x32xf32> to vector<8x32xf32>
      %55 = arith.mulf %53, %54 : vector<8x32xf32>
      %56 = arith.addf %51, %55 : vector<8x32xf32>
      %cst_19 = arith.constant 1.000000e+00 : f32
      %57 = vector.broadcast %cst_19 : f32 to vector<8x1xf32>
      %58 = arith.divf %57, %40 : vector<8x1xf32>
      %59 = vector.broadcast %58 : vector<8x1xf32> to vector<8x32xf32>
      %60 = arith.mulf %56, %59 : vector<8x32xf32>
      %c0_20 = arith.constant 0 : index
      %c0_21 = arith.constant 0 : index
      %c0_22 = arith.constant 0 : index
      %61 = vector.load %arg6[%c0_20, %c0_21, %c0_22] : memref<1x8x40xf32, #tpu.memory_space<vmem>>, vector<1x8x32xf32>
      %62 = vector.shape_cast %61 : vector<1x8x32xf32> to vector<8x32xf32>
      %63 = vector.shape_cast %60 : vector<8x32xf32> to vector<1x8x32xf32>
      tpu.vector_store %arg6[%c0_20, %c0_21, %c0_22], %63 {strides = array<i32>} : memref<1x8x40xf32, #tpu.memory_space<vmem>>, vector<1x8x32xf32>,
      %64 = arith.subi %6, %5 : vector<8x1xi32>
      %cst_23 = arith.constant 0.000000e+00 : f32
      %65 = vector.broadcast %cst_23 : f32 to vector<8x8xf32>
      %c0_i32_24 = arith.constant 0 : i32
      %66 = vector.broadcast %c0_i32_24 : i32 to vector<8x1xi32>
      %67 = arith.cmpi eq, %64, %66 : vector<8x1xi32>
      %68 = arith.extui %67 : vector<8x1xi1> to vector<8x1xi32>
      %69 = arith.sitofp %68 : vector<8x1xi32> to vector<8x1xf32>
      %c0_25 = arith.constant 0 : index
      %c0_26 = arith.constant 0 : index
      %70 = vector.load %arg5[%c0_25, %c0_26] : memref<4x8xf32, #tpu.memory_space<vmem>>, vector<1x8xf32>
      %71 = vector.broadcast %69 : vector<8x1xf32> to vector<8x8xf32>
      %72 = vector.broadcast %70 : vector<1x8xf32> to vector<8x8xf32>
      %73 = arith.mulf %71, %72 : vector<8x8xf32>
      %74 = arith.addf %65, %73 : vector<8x8xf32>
      %c1_i32_27 = arith.constant 1 : i32
      %75 = vector.broadcast %c1_i32_27 : i32 to vector<8x1xi32>
      %76 = arith.cmpi eq, %64, %75 : vector<8x1xi32>
      %77 = arith.extui %76 : vector<8x1xi1> to vector<8x1xi32>
      %78 = arith.sitofp %77 : vector<8x1xi32> to vector<8x1xf32>
      %c1 = arith.constant 1 : index
      %c0_28 = arith.constant 0 : index
      %79 = vector.load %arg5[%c1, %c0_28] : memref<4x8xf32, #tpu.memory_space<vmem>>, vector<1x8xf32>
      %80 = vector.broadcast %78 : vector<8x1xf32> to vector<8x8xf32>
      %81 = vector.broadcast %79 : vector<1x8xf32> to vector<8x8xf32>
      %82 = arith.mulf %80, %81 : vector<8x8xf32>
      %83 = arith.addf %74, %82 : vector<8x8xf32>
      %c2_i32 = arith.constant 2 : i32
      %84 = vector.broadcast %c2_i32 : i32 to vector<8x1xi32>
      %85 = arith.cmpi eq, %64, %84 : vector<8x1xi32>
      %86 = arith.extui %85 : vector<8x1xi1> to vector<8x1xi32>
      %87 = arith.sitofp %86 : vector<8x1xi32> to vector<8x1xf32>
      %c2 = arith.constant 2 : index
      %c0_29 = arith.constant 0 : index
      %88 = vector.load %arg5[%c2, %c0_29] : memref<4x8xf32, #tpu.memory_space<vmem>>, vector<1x8xf32>
      %89 = vector.broadcast %87 : vector<8x1xf32> to vector<8x8xf32>
      %90 = vector.broadcast %88 : vector<1x8xf32> to vector<8x8xf32>
      %91 = arith.mulf %89, %90 : vector<8x8xf32>
      %92 = arith.addf %83, %91 : vector<8x8xf32>
      %c3_i32_30 = arith.constant 3 : i32
      %93 = vector.broadcast %c3_i32_30 : i32 to vector<8x1xi32>
      %94 = arith.cmpi eq, %64, %93 : vector<8x1xi32>
      %95 = arith.extui %94 : vector<8x1xi1> to vector<8x1xi32>
      %96 = arith.sitofp %95 : vector<8x1xi32> to vector<8x1xf32>
      %c3 = arith.constant 3 : index
      %c0_31 = arith.constant 0 : index
      %97 = vector.load %arg5[%c3, %c0_31] : memref<4x8xf32, #tpu.memory_space<vmem>>, vector<1x8xf32>
      %98 = vector.broadcast %96 : vector<8x1xf32> to vector<8x8xf32>
      %99 = vector.broadcast %97 : vector<1x8xf32> to vector<8x8xf32>
      %100 = arith.mulf %98, %99 : vector<8x8xf32>
      %101 = arith.addf %92, %100 : vector<8x8xf32>
      %c0_32 = arith.constant 0 : index
      %c0_33 = arith.constant 0 : index
      %c32 = arith.constant 32 : index
      %102 = vector.load %arg6[%c0_32, %c0_33, %c32] : memref<1x8x40xf32, #tpu.memory_space<vmem>>, vector<1x8x8xf32>
      %103 = vector.shape_cast %102 : vector<1x8x8xf32> to vector<8x8xf32>
      %104 = vector.shape_cast %101 : vector<8x8xf32> to vector<1x8x8xf32>
      tpu.vector_store %arg6[%c0_32, %c0_33, %c32], %104 {strides = array<i32>} : memref<1x8x40xf32, #tpu.memory_space<vmem>>, vector<1x8x8xf32>,
    } else {
    }
    return
  }
  func.func @transform_0(%arg0: i32, %arg1: i32, %arg2: i32) -> (i32, i32, i32) {
    %c0_i32 = arith.constant 0 : i32
    %c0_i32_0 = arith.constant 0 : i32
    return %arg0, %arg1, %c0_i32 : i32, i32, i32
  }
  func.func @transform_1(%arg0: i32, %arg1: i32, %arg2: i32) -> (i32, i32, i32) {
    %c0_i32 = arith.constant 0 : i32
    %c0_i32_0 = arith.constant 0 : i32
    return %arg0, %arg2, %c0_i32 : i32, i32, i32
  }
  func.func @transform_2(%arg0: i32, %arg1: i32, %arg2: i32) -> (i32, i32) {
    %c0_i32 = arith.constant 0 : i32
    %c0_i32_0 = arith.constant 0 : i32
    %c0_i32_1 = arith.constant 0 : i32
    return %c0_i32, %c0_i32_0 : i32, i32
  }
  func.func @transform_3(%arg0: i32, %arg1: i32, %arg2: i32) -> (i32, i32, i32) {
    %c0_i32 = arith.constant 0 : i32
    %c0_i32_0 = arith.constant 0 : i32
    return %arg0, %arg1, %c0_i32 : i32, i32, i32
  }
}

</mosaic_0001>

<bundles_post_ra>
// kernel: tpu_custom_call.1
= control target key start
LH: loop header
LB: loop body
LE: loop exit
PB: predicated region body
PF: predicated region fallthrough
CT: control target
= control target key end

     0   :  { %8 = vsyncpa [#allocation4], 0  ;;  %s887_s0 = inlined_call_operand.vmem [shape: s32[2,8,2], index: 0, kind: input, shape index: {}]   ;;  %s888_s1 = inlined_call_operand.vmem [shape: bf16[2,16,32], index: 1, kind: input, shape index: {}]   ;;  %s889_s2 = inlined_call_operand.vmem [shape: f32[4,8], index: 2, kind: input, shape index: {}]   ;;  %s890_s3 = inlined_call_operand.hbm [shape: f32[2,8,40], index: 3, kind: output, shape index: {}]  }
   0x1   :  { %10 = vsyncpa [#allocation4 + $0x1], 0  ;;  %s753_s12 = smov 0   ;;  %s755_s13 = smov 0  }
   0x2   :  { %s757_s14 = smov 0   ;;  %s759_s15 = smov 0  }
   0x3   :  { %s761_s16 = smov 0   ;;  %s763_s17 = smov 0  }
   0x4 LB: > { %s539_s18 = sadd.s32 4294967295, %s724_s17   ;;  %s540_s19 = sadd.s32 4294967294, %s724_s17   ;;  %s724_s17 = sphi %s763_s17, %s16_s17   ;;  %s720_s16 = sphi %s761_s16, %s897_s16   ;;  %s716_s15 = sphi %s759_s15, %s896_s15   ;;  %s712_s14 = sphi %s757_s14, %s895_s14   ;;  %s708_s13 = sphi %s755_s13, %s894_s13   ;;  %s704_s12 = sphi %s753_s12, %s893_s12  }
   0x5   : > { %s35_s20 = sadd.s32 1, %s720_s16  ;;  %s121_s21 = sadd.s32 1, %s712_s14 }
   0x6   : > { %p37_p0 = scmp.ge.s32.totalorder %s35_s20, 2  ;;  %p131_p1 = scmp.ne.s32.totalorder %s712_s14, %s708_s13 }
   0x7   : > { %p132_p2 = scmp.eq.s32.totalorder %s539_s18, 1  ;;  %p137_p3 = scmp.ne.s32.totalorder %s708_s13, %s704_s12 }
   0x8   : > { %s899_s20 = smov (%p37_p0, %s35_s20), 0  ;;  %p138_p5 = scmp.eq.s32.totalorder %s540_s19, 1 }
   0x9   : > { %p793_p4 = por %p132_p2, %p131_p1  ;;  %s116_s23 = ssub.s32 %s720_s16, %s899_s20 }
   0xa   : > { %p543_p6 = scmp.ge.s32.totalorder %s724_s17, 1  ;;  %p119_p7 = scmp.eq.s32.totalorder %s116_s23, 0 }
   0xb   : > { %p800_p8 = por %p138_p5, %p137_p3  ;;  %p182_p9 = scmp.lt.s32.totalorder %s724_s17, 3 }
   0xc   : > { %s806_s25 = scalar_select %p119_p7, %s712_s14, %s121_s21  }
   0xd   : > { %p183_p10 = pnand %p543_p6, %p182_p9 }
   0xe   : > { %p217_p11 = scmp.lt.s32.totalorder (!%p183_p10), %s716_s15, 1  ;;  %v726_v0 = vmov (!%p183_p10), 1   ;;  %v727_v1 = vmov (!%p183_p10), 0   ;;  %s728_s4 = smov (!%p183_p10), 1   ;;  %v729_v8 = vmov (!%p183_p10), 0.0   ;;  %vm730_vm3 = vmmov (!%p183_p10), 0  }
   0xf   : > { %186 = sbr.rel (%p183_p10) target bundleno = 553 (0x229), region = 32  ;;  %636 = vset.pattern.permute.xlu1 (!%p183_p10), %v726_v0  ;;  %635 = vset.pattern.permute.xlu0 (!%p183_p10), %v727_v1  ;;  %v251_v10 = vlaneseq (!%p183_p10)  ;;  %vm275_vm7 = vcmask (!%p183_p10), 130048   ;;  %vm239_vm15 = vcmask (!%p183_p10), 261120   ;;  %v554_v34 = vld [vmem:[%s889_s2] ss:$0 sm:$0xff] (!%p183_p10) }
  0x10   : > { %568 = vmatprep.subr.bf16.mxu0 (!%p183_p10), %v729_v8  ;;  %570 = vmatprep.mubr.msk.bf16.mxu0 (!%p183_p10), %vm730_vm3, %v729_v8  ;;  %240 = vst.msk [vmem:[#allocation2] sm:$0xff] (!%p183_p10), %vm239_vm15, %v729_v8  ;;  %v556_v35 = vld [vmem:[%s889_s2 + $0x1] ss:$0 sm:$0xff] (!%p183_p10)  ;;  %v558_v39 = vld [vmem:[%s889_s2 + $0x2] ss:$0 sm:$0xff] (!%p183_p10) }
  0x11   : > { %v252_v11 = vand.u32 (!%p183_p10), 127, %v251_v10  ;;  %v560_v42 = vld [vmem:[%s889_s2 + $0x3] ss:$0 sm:$0xff] (!%p183_p10)  ;;  %v352_v49 = vshrl.u32 (!%p183_p10), %v251_v10, 7 }
  0x13   : > { %v353_v54 = vsub.s32 (!%p183_p10), 7, %v352_v49 }
  0x16   : > { %s218_s26 = scalar_select %p217_p11, %s716_s15, 1 }
  0x17   : > { %v268_v51 = vld [vmem:[#allocation2] sm:$0xff] }
  0x18   : > { %s545_s27 = sshll.u32 %s218_s26, 3  ;;  %s731_s26 = smov 32  }
  0x19   : > { %s223_s30 = scalar_lea.vmem %s887_s0, %s545_s27  ;;  %s816_s7 = scalar_lea.vmem %s888_s1, %s545_s27 }
  0x1a   : > { %v241_v2 = vld [vmem:[%s223_s30] sm:$0xff]  ;;  %s214_s27 = sand.u32 1, %s708_s13   ;;  %s562_s30 = sshll.u32 %s716_s15, 7 }
  0x1b   : > { %v244_v3 = vadd.s32 3, %v241_v2  ;;  %v643_v7 = vld [vmem:[%s816_s7] sm:$0xff]   ;;  %vm334_vm2 = vcmp.gt.s32.totalorder %v241_v2, 15  ;;  %s544_s28 = sshll.u32 %s214_s27, 3  ;;  %s433_s8 = scalar_lea.sflag [#allocation4], %s214_s27 }
  0x1c   : > { %569 = vmatpush3.bf16.msra.mxu0 %v643_v7  ;;  %v335_v9 = vsel %vm334_vm2, %v241_v2, 15  ;;  %v342_v50 = vld [vmem:[%s816_s7 + $0x4] sm:$0x8]  ;;  %s216_s29 = scalar_lea.vmem [#allocation3], %s544_s28  ;;  %s840_s7 = scalar_lea.hbm %s890_s3, %s562_s30 }
  0x1d   : > { %245 = vrot.lane.b32.xlu0 %v244_v3, %s728_s4  ;;  %v343_v53 = vunpack.c.l.bf16 %v342_v50  ;;  %s732_s15 = smov [#allocation3]  }
  0x1e   : > { %s650_s10 = sshll.u32 %s732_s15, 4  ;;  %s651_s10 = int_to_ptr.vmem [resolvable:$false] %s650_s10 }
  0x1f   : > { %v354_v59 = vrot.slane %v343_v53, %v353_v54  ;;  %s652_s11 = scalar_lea.vmem %s651_s10, 256 }
  0x21   : > { %257 = vperm.xlu0 %635, %v241_v2  }
  0x25   : > { %637 = vset.pattern.permute.xlu0 %v726_v0 }
  0x8f   : > { %v246_v4 = vpop.permute.xlu0 %245 }
  0x90   : > { %vm247_vm0 = vcmp.lt.s32.totalorder %v241_v2, %v246_v4 }
  0x91   : > { %v248_v5 = vsel %vm247_vm0, %v241_v2, %v246_v4  ;;  %vm430_vm0 = vcmask 326912  }
  0x92   : > { %vm249_vm1 = vcmp.lt.s32.totalorder %v248_v5, 14 }
  0x93   : > { %v250_v6 = vsel %vm249_vm1, %v248_v5, 14 }
  0x94   : > { %261 = vperm.xlu1 %636, %v250_v6  }
  0x98   : > { %325 = vrot.lane.b32.xlu1 %v241_v2, %s728_s4 }
  0x9c   : > { %336 = vrot.lane.b32.xlu1 %v335_v9, %s728_s4  ;;  %s447_s4 = sshll.u32 %s216_s29, 4  ;;  %s842_s4 = int_to_ptr.vmem [resolvable:$true] %s447_s4 }
  0x9d   : > { %s646_s9 = scalar_lea.vmem %s842_s4, 128  ;;  %p653_p1 = scmp.lt.s32.totalorder %s842_s4, %s651_s10 }
  0x9e   : > { %p647_p12 = scmp.ne.s32.totalorder %s842_s4, %s646_s9  ;;  %p654_p2 = scmp.lt.s32.totalorder %s652_s11, %s646_s9 }
  0xa0   : > { %v258_v12 = vpop.permute.xlu0 %257  ;;  %p648_p13 = pnand %p647_p12, %p793_p4  ;;  %p655_p3 = por %p654_p2, %p653_p1 }
  0xa1   : > { %vm259_vm4 = vcmp.ge.s32.totalorder %v252_v11, %v258_v12 }
  0xa2   : > { %p649_p0 = pneg %p648_p13 }
  0xa4   : > { %p656_p5 = pnand %p655_p3, %p649_p0 }
 0x113   : > { %v262_v13 = vpop.permute.xlu1 %261 }
 0x114   : > { %vm263_vm5 = vcmp.le.s32.totalorder %v252_v11, %v262_v13 }
 0x115   : > { %vm264_vm6 = vmand %vm259_vm4, %vm263_vm5 }
 0x116   : > { %v548_v14 = vsel %vm264_vm6, 1.0, %v729_v8 }
 0x117   : > { %v267_v15 = vpack.c.bf16 %v548_v14, %v548_v14  ;;  %v326_v16 = vpop.permute.xlu1 %325 }
 0x118   : > { %v327_v17 = vsub.s32 %v241_v2, %v326_v16 }
 0x119   : > { %571 = vmatmul.mubr.msk.bf16.vlgmr.msra.gmra.mrb[0].mxu0 %vm275_vm7, %v267_v15 }
 0x11a   : > { %v328_v18 = vadd.s32 1, %v327_v17  ;;  %vm396_vm8 = vcmp.eq.s32.totalorder %v327_v17, 2  ;;  %vm366_vm9 = vcmp.eq.s32.totalorder %v327_v17, 0  ;;  %vm381_vm10 = vcmp.eq.s32.totalorder %v327_v17, 1 }
 0x11b   : > { %v337_v19 = vpop.permute.xlu1 %336  ;;  %v557_v20 = vsel %vm396_vm8, 1.0, %v729_v8  ;;  %v553_v21 = vsel %vm366_vm9, 1.0, %v729_v8  ;;  %v555_v22 = vsel %vm381_vm10, 1.0, %v729_v8  ;;  %vm411_vm12 = vcmp.eq.s32.totalorder %v327_v17, 3 }
 0x11c   : > { %vm329_vm11 = vcmp.gt.s32.totalorder %v328_v18, 0  ;;  %v338_v23 = vsub.s32 %v248_v5, %v337_v19  ;;  %402 = vperm.xlu1 %636, %v557_v20   ;;  %v638_v24 = vpack.i.bf16 %v555_v22, %v553_v21  ;;  %v559_v28 = vsel %vm411_vm12, 1.0, %v729_v8 }
 0x11d   : > { %v330_v25 = vsel %vm329_vm11, %v328_v18, 0 }
 0x11e   : > { %vm331_vm13 = vcmp.lt.s32.totalorder %v330_v25, 4  ;;  %v339_v26 = vadd.s32 1, %v338_v23  ;;  %639 = vperm.xlu0 %637, %v638_v24  }
 0x11f   : > { %v332_v27 = vsel %vm331_vm13, %v330_v25, 4 }
 0x120   : > { %v333_v29 = vcvt.s32.f32 %v332_v27  ;;  %v551_v30 = vcvt.s32.f32 %v339_v26  ;;  %417 = vperm.xlu1 %636, %v559_v28   ;;  %vm340_vm14 = vcmp.gt.s32.totalorder %v339_v26, 0 }
 0x122   : > { %644 = vrcp.f32 %v333_v29  ;;  %v552_v31 = vsel %vm340_vm14, %v551_v30, 0.0 }
 0x123   : > { %348 = vperm.xlu0 %637, %v552_v31  }
 0x12c   : > { %v645_v32 = vpop.eup %644 }
 0x12d   : > { %361 = vperm.xlu1 %636, %v645_v32  }
 0x19b   : > { %v403_v33 = vpop.permute.xlu1 %402 }
 0x19c   : > { %v409_v44 = vmul.f32 %v558_v39, %v403_v33 }
 0x19d   : > { %v640_v36 = vpop.permute.xlu0 %639 }
 0x19e   : > { %v642_v37 = vunpack.i.h.bf16 %v640_v36  ;;  %v641_v38 = vunpack.i.l.bf16 %v640_v36 }
 0x19f   : > { %v418_v43 = vpop.permute.xlu1 %417 }
 0x1a0   : > { %v394_v40 = vmul.f32 %v642_v37, %v556_v35  ;;  %v379_v41 = vmul.f32 %v641_v38, %v554_v34  ;;  %v424_v47 = vmul.f32 %v560_v42, %v418_v43 }
 0x1a2   : > { %v395_v45 = vadd.f32 %v394_v40, %v379_v41  ;;  %v349_v60 = vpop.permute.xlu0 %348 }
 0x1a3   : > { %v355_v61 = vmul.f32 %v354_v59, %v349_v60 }
 0x1a4   : > { %v410_v46 = vadd.f32 %v409_v44, %v395_v45 }
 0x1a6   : > { %v425_v48 = vadd.f32 %v424_v47, %v410_v46 }
 0x1a8   : > { %427 = vrot.lane.b32.xlu0 %v425_v48, %s731_s26 }
 0x1ac   : > { %v362_v0 = vpop.permute.xlu1 %361 }
 0x1ec   : > { %v313_v52 = vpop.f32.mrb[0].mxu0 }
 0x1ed   : > { %v319_v55 = vadd.f32 %v313_v52, %v268_v51  ;;  %v572_v56 = vpop.f32.mrb[1].mxu0 }
 0x1ee   : > { %v316_v57 = vpop.f32.mrb[2].mxu0 }
 0x1ef   : > { %321 = vst.msk [vmem:[#allocation2] sm:$0xff] %vm239_vm15, %v319_v55  ;;  %v573_v58 = vpop.f32.mrb[3].mxu0 }
 0x1f6   : > { %v344_v62 = vld [vmem:[#allocation2] sm:$0xff] }
 0x1f7   : > { %v356_v63 = vadd.f32 %v355_v61, %v344_v62 }
 0x1f9   : > { %v364_v1 = vmul.f32 %v362_v0, %v356_v63 }
 0x1fb   : > { %365 = vst.msk [vmem:[%s216_s29] sm:$0xff] %vm239_vm15, %v364_v1 }
 0x21a   : > { %v428_v2 = vpop.permute.xlu0 %427 }
 0x21b   : > { %431 = vst.msk [vmem:[%s216_s29] sm:$0xff] %vm430_vm0, %v428_v2 }
 0x21c   : > { %659 = shalt.err (!%p656_p5)
}
 0x21d   : > { %s660_s18 = scalar_lea.hbm %s840_s7, 128  ;;  %s664_s23 = scalar_lea.hbm %s890_s3, 256 }
 0x21e   : > { %p661_p6 = scmp.ne.s32.totalorder %s840_s7, %s660_s18  ;;  %p665_p10 = scmp.lt.u32.totalorder %s840_s7, %s890_s3 }
 0x21f   : > { %p666_p11 = scmp.lt.u32.totalorder %s664_s23, %s660_s18  ;;  %p668_p13 = scmp.lt.u32.totalorder %s660_s18, %s840_s7 }
 0x220   : > { %p662_p7 = pnand %p661_p6, %p793_p4 }
 0x221   : > { %p667_p12 = por %p666_p11, %p665_p10 }
 0x222   : > { %p663_p9 = pneg %p662_p7 }
 0x223   : > { %p669_p0 = por %p668_p13, %p667_p12 }
 0x225   : > { %p670_p1 = pnand %p669_p0, %p663_p9 }
 0x227   : > { %673 = shalt.err (!%p670_p1)
}
 0x228   : > { %574 = dma.vmem_to_hbm [thread:$0]  (%p793_p4), %s842_s4, 128, %s840_s7, %s433_s8  }
 0x229 PF: > { %p580_p2 = scmp.ge.s32.totalorder %s724_s17, 2  ;;  %s459_s28 = sand.u32 1, %s704_s12  }
 0x22a   : > { %s460_s29 = scalar_lea.sflag [#allocation4], %s459_s28 }
 0x22b   : > { %p577_p3 = pnand %p580_p2, %p800_p8 }
 0x22d   : > { %699 = dma.done.wait (!%p577_p3), %s460_s29, 128  }
 0x22e   : > { %701 = vsyncadd (!%p577_p3), %s460_s29, 4294967168  ;;  %s16_s17 = sadd.s32 1, %s724_s17   ;;  %s893_s12 = smov %s708_s13 }
 0x22f   : > { %p13_p5 = scmp.ge.s32.totalorder %s16_s17, 4   ;;  %s894_s13 = smov %s712_s14 }
 0x230   : > { %s895_s14 = smov %s806_s25  ;;  %s896_s15 = smov %s720_s16 }
 0x231   : > { %s897_s16 = smov %s899_s20  ;;  %15 = sbr.rel (!%p13_p5) target bundleno = 4 (0x4), region = 78 }
 0x238   :  { %465 = vsyncpa [#allocation4], 1 }
 0x239   :  { %467 = vsyncpa [#allocation4 + $0x1], 1 }

</bundles_post_ra>
